<compile_context>
chip_gen: v6e
topology: v6e:2x2x1
jax: 0.10.0
libtpu: 0.0.40
codegen_flags: <defaults>
</compile_context>

<pallas_src>
import jax
import jax.numpy as jnp
from jax.experimental import pallas as pl
from jax.experimental.pallas import tpu as pltpu


# ~8 MiB per x block.  Double-buffered in + out => ~32 MiB of VMEM buffers;
# vmem_limit_bytes=40 MiB leaves headroom and fits every generation
# (v7x: 64 MiB physical, v6e/v5e: 128 MiB physical).
_BLOCK_BUDGET_BYTES = 8 * 1024 * 1024
_VMEM_LIMIT_BYTES = 40 * 1024 * 1024
_MAX_BATCH_BLOCK = 16   # cap on batches per block (kernel unrolls over it)


# ----------------------------------------------------------------------------
# Faithful LayerNormS.forward: identity (to_3d immediately followed by to_4d).
# ----------------------------------------------------------------------------
def layernorm_s_forward(x):
    """Exact reproduction of LayerNormS.forward.

    to_4d(to_3d(x), h, w) is the identity on the NCHW input; the layernorm
    body is never applied.  Returning x directly is the correct and fastest
    path on every TPU generation (no HBM read/write of the whole tensor).
    """
    return x


# ----------------------------------------------------------------------------
# WithBias_LayerNorm body as a Pallas kernel (constructed by LayerNormS.__init__
# for the default LayerNorm_type; not called by the reference forward).
#
# Block layout: x block is (Bt, C, T) of the (B, C, HW) view.  C sits on the
# sublane axis (full extent), T (a slice of HW) on lanes, so both loads and
# stores are lane-dense.  The kernel unrolls over the small static Bt and does
# the proven 2-D sublane reduction per batch entry.
# ----------------------------------------------------------------------------
def _withbias_ln_kernel(x_ref, w_ref, b_ref, o_ref):
    # x_ref: (Bt, C, T); w_ref/b_ref: (C, 1)
    w = w_ref[...].astype(jnp.float32)                   # (C, 1) lane-broadcast
    b = b_ref[...].astype(jnp.float32)
    bt = x_ref.shape[0]
    for i in range(bt):                                  # static, small unroll
        x = x_ref[i].astype(jnp.float32)                 # (C, T)
        mu = jnp.mean(x, axis=0, keepdims=True)          # reduce over C (sublanes)
        d = x - mu
        var = jnp.mean(d * d, axis=0, keepdims=True)     # unbiased=False
        y = d * jax.lax.rsqrt(var + 1e-5)                # EUP rsqrt
        o_ref[i] = (y * w + b).astype(o_ref.dtype)


def _largest_divisor_under(n, cap):
    """Largest divisor of n that is <= cap (at least 1)."""
    d = max(1, min(n, cap))
    while d > 1 and n % d != 0:
        d -= 1
    return d


def _largest_128_multiple_divisor(n, cap):
    """Largest multiple of 128 that divides n and is <= cap, else None."""
    k = min(n, cap) // 128
    while k >= 1:
        t = 128 * k
        if n % t == 0:
            return t
        k -= 1
    return None


def withbias_layernorm_body(x_nchw, weight, bias):
    """WithBias_LayerNorm over channels (the to_3d layout), returned in NCHW."""
    B, C, H, W = x_nchw.shape
    HW = H * W
    itemsize = x_nchw.dtype.itemsize

    # Lane-axis budget for one block (at least one 128-lane vreg column).
    cols_budget = max(128, _BLOCK_BUDGET_BYTES // (C * itemsize))

    if HW <= cols_budget:
        # Full-extent HW block; amortize per-step overhead by blocking batches.
        hw_tile = HW
        bt_cap = max(1, min(_MAX_BATCH_BLOCK,
                            _BLOCK_BUDGET_BYTES // (C * HW * itemsize)))
        bt = _largest_divisor_under(B, bt_cap)
    else:
        bt = 1
        # Largest 128-multiple divisor of HW under the budget -> no padded tail.
        hw_tile = _largest_128_multiple_divisor(HW, cols_budget)
        if hw_tile is None:
            # TODO(synk): HW has no 128-multiple divisor under the budget;
            # fall back to a padded tail block (padding columns are discarded,
            # correctness unaffected since the reduction is over C).
            hw_tile = (cols_budget // 128) * 128

    x3 = x_nchw.reshape(B, C, HW)      # pure reshape of NCHW -- no transpose
    w2 = weight.reshape(C, 1)
    b2 = bias.reshape(C, 1)

    grid = (B // bt, pl.cdiv(HW, hw_tile))
    # TODO(synk): add input_output_aliases={0: 0} when the caller donates x
    # (in-place write, halves HBM footprint); left off here so the standalone
    # eager call never trips buffer-donation requirements.
    y3 = pl.pallas_call(
        _withbias_ln_kernel,
        out_shape=jax.ShapeDtypeStruct((B, C, HW), x_nchw.dtype),
        grid=grid,
        in_specs=[
            pl.BlockSpec((bt, C, hw_tile), lambda i, t: (i, 0, t)),
            pl.BlockSpec((C, 1), lambda i, t: (0, 0)),
            pl.BlockSpec((C, 1), lambda i, t: (0, 0)),
        ],
        out_specs=pl.BlockSpec((bt, C, hw_tile), lambda i, t: (i, 0, t)),
        compiler_params=pltpu.CompilerParams(
            dimension_semantics=("parallel", "parallel"),
            vmem_limit_bytes=_VMEM_LIMIT_BYTES),
    )(x3, w2, b2)
    return y3.reshape(B, C, H, W)


# TODO(synk): BiasFree_LayerNorm body (x / sqrt(var + eps) * weight, no mean
# subtraction, no bias) is the trivial variant of the kernel above; omitted
# since LayerNormS defaults to the WithBias branch and forward calls neither.


if __name__ == "__main__":
    key = jax.random.PRNGKey(0)
    B, C, H, W = 2, 32, 16, 16          # dim = C = 32
    x = jax.random.normal(key, (B, C, H, W), dtype=jnp.float32)

    # Deterministic parameters matching WithBias_LayerNorm.__init__(dim).
    weight = jnp.ones((C,), dtype=jnp.float32)
    bias = jnp.zeros((C,), dtype=jnp.float32)

    # Faithful forward (identity -- to_3d then to_4d).
    out = jax.block_until_ready(layernorm_s_forward(x))
    assert out.shape == x.shape and out.dtype == x.dtype
    assert jnp.array_equal(out, x), "LayerNormS.forward must be identity"

    # Exercise the layernorm-body Pallas kernel and check against a pure-JAX
    # reference computed in the to_3d 'b (h w) c' layout, as PyTorch would.
    y = jax.block_until_ready(withbias_layernorm_body(x, weight, bias))
    x3d = jnp.transpose(x, (0, 2, 3, 1)).reshape(B, H * W, C)
    mu = jnp.mean(x3d, axis=-1, keepdims=True)
    var = jnp.mean((x3d - mu) ** 2, axis=-1, keepdims=True)
    ref3d = (x3d - mu) / jnp.sqrt(var + 1e-5) * weight + bias
    ref = jnp.transpose(ref3d.reshape(B, H, W, C), (0, 3, 1, 2))
    assert jnp.allclose(y, ref, atol=1e-5, rtol=1e-5)

    print("KERNEL_OK")
</pallas_src>

<mosaic_0001>
module attributes {stable_mosaic.version = 11 : i64} {
  func.func @_withbias_ln_kernel(%arg0: i32, %arg1: i32, %arg2: memref<2x32x256xf32, #tpu.memory_space<vmem>>, %arg3: memref<32x1xf32, #tpu.memory_space<vmem>>, %arg4: memref<32x1xf32, #tpu.memory_space<vmem>>, %arg5: memref<2x32x256xf32, #tpu.memory_space<vmem>>) attributes {dimension_semantics = [#tpu.dimension_semantics<parallel>, #tpu.dimension_semantics<parallel>], iteration_bounds = array<i64: 1, 1>, scalar_prefetch = 0 : i64, scratch_operands = 0 : i64, tpu.core_type = #tpu.core_type<tc>, window_params = [{transform_indices = @transform_0, window_bounds = array<i64: 2, 32, 256>}, {pipeline_mode = #tpu.pipeline_mode<synchronous>, transform_indices = @transform_1, window_bounds = array<i64: 32, 1>}, {pipeline_mode = #tpu.pipeline_mode<synchronous>, transform_indices = @transform_2, window_bounds = array<i64: 32, 1>}, {transform_indices = @transform_3, window_bounds = array<i64: 2, 32, 256>}]} {
    %c0 = arith.constant 0 : index
    %c0_0 = arith.constant 0 : index
    %0 = vector.load %arg3[%c0, %c0_0] : memref<32x1xf32, #tpu.memory_space<vmem>>, vector<32x1xf32>
    %c0_1 = arith.constant 0 : index
    %c0_2 = arith.constant 0 : index
    %1 = vector.load %arg4[%c0_1, %c0_2] : memref<32x1xf32, #tpu.memory_space<vmem>>, vector<32x1xf32>
    %c0_3 = arith.constant 0 : index
    %c0_4 = arith.constant 0 : index
    %c0_5 = arith.constant 0 : index
    %2 = vector.load %arg2[%c0_3, %c0_4, %c0_5] : memref<2x32x256xf32, #tpu.memory_space<vmem>>, vector<1x32x256xf32>
    %3 = vector.shape_cast %2 : vector<1x32x256xf32> to vector<32x256xf32>
    %cst = arith.constant dense<0.000000e+00> : vector<256xf32>
    %4 = vector.multi_reduction <add>, %3, %cst [0] : vector<32x256xf32> to vector<256xf32>
    %5 = vector.shape_cast %4 : vector<256xf32> to vector<1x256xf32>
    %cst_6 = arith.constant 3.200000e+01 : f32
    %6 = vector.broadcast %cst_6 : f32 to vector<1x256xf32>
    %7 = arith.divf %5, %6 : vector<1x256xf32>
    %8 = vector.broadcast %7 : vector<1x256xf32> to vector<32x256xf32>
    %9 = arith.subf %3, %8 : vector<32x256xf32>
    %10 = arith.mulf %9, %9 : vector<32x256xf32>
    %cst_7 = arith.constant dense<0.000000e+00> : vector<256xf32>
    %11 = vector.multi_reduction <add>, %10, %cst_7 [0] : vector<32x256xf32> to vector<256xf32>
    %12 = vector.shape_cast %11 : vector<256xf32> to vector<1x256xf32>
    %cst_8 = arith.constant 3.200000e+01 : f32
    %13 = vector.broadcast %cst_8 : f32 to vector<1x256xf32>
    %14 = arith.divf %12, %13 : vector<1x256xf32>
    %cst_9 = arith.constant 9.99999974E-6 : f32
    %15 = vector.broadcast %cst_9 : f32 to vector<1x256xf32>
    %16 = arith.addf %14, %15 : vector<1x256xf32>
    %17 = math.rsqrt %16 : vector<1x256xf32>
    %18 = vector.broadcast %17 : vector<1x256xf32> to vector<32x256xf32>
    %19 = arith.mulf %9, %18 : vector<32x256xf32>
    %20 = vector.broadcast %0 : vector<32x1xf32> to vector<32x256xf32>
    %21 = arith.mulf %19, %20 : vector<32x256xf32>
    %22 = vector.broadcast %1 : vector<32x1xf32> to vector<32x256xf32>
    %23 = arith.addf %21, %22 : vector<32x256xf32>
    %c0_10 = arith.constant 0 : index
    %c0_11 = arith.constant 0 : index
    %c0_12 = arith.constant 0 : index
    %24 = vector.load %arg5[%c0_10, %c0_11, %c0_12] : memref<2x32x256xf32, #tpu.memory_space<vmem>>, vector<1x32x256xf32>
    %25 = vector.shape_cast %24 : vector<1x32x256xf32> to vector<32x256xf32>
    %26 = vector.shape_cast %23 : vector<32x256xf32> to vector<1x32x256xf32>
    tpu.vector_store %arg5[%c0_10, %c0_11, %c0_12], %26 {strides = array<i32>} : memref<2x32x256xf32, #tpu.memory_space<vmem>>, vector<1x32x256xf32>,
    %c1 = arith.constant 1 : index
    %c0_13 = arith.constant 0 : index
    %c0_14 = arith.constant 0 : index
    %27 = vector.load %arg2[%c1, %c0_13, %c0_14] : memref<2x32x256xf32, #tpu.memory_space<vmem>>, vector<1x32x256xf32>
    %28 = vector.shape_cast %27 : vector<1x32x256xf32> to vector<32x256xf32>
    %cst_15 = arith.constant dense<0.000000e+00> : vector<256xf32>
    %29 = vector.multi_reduction <add>, %28, %cst_15 [0] : vector<32x256xf32> to vector<256xf32>
    %30 = vector.shape_cast %29 : vector<256xf32> to vector<1x256xf32>
    %cst_16 = arith.constant 3.200000e+01 : f32
    %31 = vector.broadcast %cst_16 : f32 to vector<1x256xf32>
    %32 = arith.divf %30, %31 : vector<1x256xf32>
    %33 = vector.broadcast %32 : vector<1x256xf32> to vector<32x256xf32>
    %34 = arith.subf %28, %33 : vector<32x256xf32>
    %35 = arith.mulf %34, %34 : vector<32x256xf32>
    %cst_17 = arith.constant dense<0.000000e+00> : vector<256xf32>
    %36 = vector.multi_reduction <add>, %35, %cst_17 [0] : vector<32x256xf32> to vector<256xf32>
    %37 = vector.shape_cast %36 : vector<256xf32> to vector<1x256xf32>
    %cst_18 = arith.constant 3.200000e+01 : f32
    %38 = vector.broadcast %cst_18 : f32 to vector<1x256xf32>
    %39 = arith.divf %37, %38 : vector<1x256xf32>
    %cst_19 = arith.constant 9.99999974E-6 : f32
    %40 = vector.broadcast %cst_19 : f32 to vector<1x256xf32>
    %41 = arith.addf %39, %40 : vector<1x256xf32>
    %42 = math.rsqrt %41 : vector<1x256xf32>
    %43 = vector.broadcast %42 : vector<1x256xf32> to vector<32x256xf32>
    %44 = arith.mulf %34, %43 : vector<32x256xf32>
    %45 = vector.broadcast %0 : vector<32x1xf32> to vector<32x256xf32>
    %46 = arith.mulf %44, %45 : vector<32x256xf32>
    %47 = vector.broadcast %1 : vector<32x1xf32> to vector<32x256xf32>
    %48 = arith.addf %46, %47 : vector<32x256xf32>
    %c1_20 = arith.constant 1 : index
    %c0_21 = arith.constant 0 : index
    %c0_22 = arith.constant 0 : index
    %49 = vector.load %arg5[%c1_20, %c0_21, %c0_22] : memref<2x32x256xf32, #tpu.memory_space<vmem>>, vector<1x32x256xf32>
    %50 = vector.shape_cast %49 : vector<1x32x256xf32> to vector<32x256xf32>
    %51 = vector.shape_cast %48 : vector<32x256xf32> to vector<1x32x256xf32>
    tpu.vector_store %arg5[%c1_20, %c0_21, %c0_22], %51 {strides = array<i32>} : memref<2x32x256xf32, #tpu.memory_space<vmem>>, vector<1x32x256xf32>,
    return
  }
  func.func @transform_0(%arg0: i32, %arg1: i32) -> (i32, i32, i32) {
    %c0_i32 = arith.constant 0 : i32
    %c0_i32_0 = arith.constant 0 : i32
    return %arg0, %c0_i32, %arg1 : i32, i32, i32
  }
  func.func @transform_1(%arg0: i32, %arg1: i32) -> (i32, i32) {
    %c0_i32 = arith.constant 0 : i32
    %c0_i32_0 = arith.constant 0 : i32
    %c0_i32_1 = arith.constant 0 : i32
    return %c0_i32, %c0_i32_0 : i32, i32
  }
  func.func @transform_2(%arg0: i32, %arg1: i32) -> (i32, i32) {
    %c0_i32 = arith.constant 0 : i32
    %c0_i32_0 = arith.constant 0 : i32
    %c0_i32_1 = arith.constant 0 : i32
    return %c0_i32, %c0_i32_0 : i32, i32
  }
  func.func @transform_3(%arg0: i32, %arg1: i32) -> (i32, i32, i32) {
    %c0_i32 = arith.constant 0 : i32
    %c0_i32_0 = arith.constant 0 : i32
    return %arg0, %c0_i32, %arg1 : i32, i32, i32
  }
}

</mosaic_0001>

<bundles_post_ra>
// kernel: tpu_custom_call.1
= control target key start
LH: loop header
LB: loop body
LE: loop exit
PB: predicated region body
PF: predicated region fallthrough
CT: control target
= control target key end

     0   :  { %8 = vsyncpa [#allocation3], 0  ;;  %s497_s0 = inlined_call_operand.hbm [shape: f32[2,32,256], index: 0, kind: input, shape index: {}]   ;;  %s498_s1 = inlined_call_operand.vmem [shape: f32[32,1], index: 1, kind: input, shape index: {}]   ;;  %s499_s2 = inlined_call_operand.vmem [shape: f32[32,1], index: 2, kind: input, shape index: {}]   ;;  %s500_s3 = inlined_call_operand.hbm [shape: f32[2,32,256], index: 3, kind: output, shape index: {}]  }
   0x1   :  { %9 = vsyncpa [#allocation4], 0  ;;  %s356_s12 = smov [#allocation2]  }
   0x2   :  { %s15_s13 = sshll.u32 %s356_s12, 4  ;;  %s16_s13 = int_to_ptr.vmem [resolvable:$true] %s15_s13 }
   0x3   :  { %s320_s14 = scalar_lea.vmem %s16_s13, 2048  ;;  %p325_p1 = scmp.lt.s32.totalorder %s16_s13, %s16_s13 }
   0x4   :  { %p321_p0 = scmp.ne.s32.totalorder %s16_s13, %s320_s14  ;;  %p326_p2 = scmp.lt.s32.totalorder %s320_s14, %s320_s14 }
   0x6   :  { %p327_p3 = por %p326_p2, %p325_p1 }
   0x8   :  { %p328_p4 = pnand %p327_p3, %p321_p0 }
   0xa   :  { %331 = shalt.err (!%p328_p4)
}
   0xb   :  { %s357_s15 = smov 256   ;;  %s358_s16 = smov 16  }
   0xc   :  { %21 = dma.hbm_to_vmem [thread:$0]  %s497_s0, 2048, %s16_s13, [#allocation3], %s357_s15, %s357_s15, %s358_s16  }
   0xd   :  { %352 = dma.done.wait [#allocation3], 2048  }
   0xe   :  { %353 = vsyncadd [#allocation3], 4294965248  ;;  %v359_v0 = vmov 0   ;;  %v31_v1 = vld [vmem:[%s498_s1 + $0x10] sm:$0xff]  ;;  %v29_v2 = vld [vmem:[%s498_s1] sm:$0xff] }
   0xf   :  { %303 = vset.pattern.permute.xlu1 %v359_v0  ;;  %302 = vset.pattern.permute.xlu0 %v359_v0  ;;  %v32_v3 = vld [vmem:[%s498_s1 + $0x18] sm:$0xff]  ;;  %v30_v4 = vld [vmem:[%s498_s1 + $0x8] sm:$0xff]  ;;  %v33_v6 = vld [vmem:[%s499_s2] sm:$0xff]  ;;  %s360_s1 = smov [#allocation5]  }
  0x10   :  { %126 = vperm.xlu1 %303, %v31_v1   ;;  %116 = vperm.xlu0 %302, %v29_v2   ;;  %v34_v5 = vld [vmem:[%s499_s2 + $0x8] sm:$0xff]  ;;  %v36_v7 = vld [vmem:[%s499_s2 + $0x18] sm:$0xff]  ;;  %v35_v8 = vld [vmem:[%s499_s2 + $0x10] sm:$0xff]  ;;  %s285_s2 = sshll.u32 %s360_s1, 4  ;;  %s286_s2 = int_to_ptr.vmem [resolvable:$true] %s285_s2 }
  0x11   :  { %v37_v9 = vld [vmem:[#allocation2] sm:$0xff]  ;;  %v39_v10 = vld [vmem:[#allocation2 + $0x10] sm:$0xff]  ;;  %v38_v11 = vld [vmem:[#allocation2 + $0x8] sm:$0xff]  ;;  %s332_s7 = scalar_lea.vmem %s286_s2, 2048  ;;  %p337_p6 = scmp.lt.s32.totalorder %s286_s2, %s286_s2 }
  0x12   :  { %v40_v12 = vld [vmem:[#allocation2 + $0x18] sm:$0xff]  ;;  %v179_v13 = vld [vmem:[#allocation2 + $0x40] sm:$0xff]  ;;  %v181_v14 = vld [vmem:[#allocation2 + $0x50] sm:$0xff]  ;;  %v45_v15 = vadd.f32 %v39_v10, %v37_v9  ;;  %p333_p5 = scmp.ne.s32.totalorder %s286_s2, %s332_s7  ;;  %p338_p7 = scmp.lt.s32.totalorder %s332_s7, %s332_s7 }
  0x13   :  { %v180_v16 = vld [vmem:[#allocation2 + $0x48] sm:$0xff]  ;;  %v182_v17 = vld [vmem:[#allocation2 + $0x58] sm:$0xff]  ;;  %v41_v18 = vld [vmem:[#allocation2 + $0x20] sm:$0xff]  ;;  %v54_v19 = vadd.f32 %v40_v12, %v38_v11  ;;  %v187_v21 = vadd.f32 %v181_v14, %v179_v13 }
  0x14   :  { %131 = vperm.xlu1 %303, %v32_v3   ;;  %121 = vperm.xlu0 %302, %v30_v4   ;;  %v42_v20 = vld [vmem:[#allocation2 + $0x28] sm:$0xff]  ;;  %v183_v22 = vld [vmem:[#allocation2 + $0x60] sm:$0xff]  ;;  %v196_v23 = vadd.f32 %v182_v17, %v180_v16  ;;  %v46_v24 = vadd.f32 %v45_v15, %v41_v18  ;;  %v43_v26 = vld [vmem:[#allocation2 + $0x30] sm:$0xff]  ;;  %p339_p8 = por %p338_p7, %p337_p6 }
  0x15   :  { %v184_v25 = vld [vmem:[#allocation2 + $0x68] sm:$0xff]  ;;  %v55_v27 = vadd.f32 %v54_v19, %v42_v20  ;;  %v44_v28 = vld [vmem:[#allocation2 + $0x38] sm:$0xff]  ;;  %v188_v29 = vadd.f32 %v187_v21, %v183_v22  ;;  %v185_v30 = vld [vmem:[#allocation2 + $0x70] sm:$0xff] }
  0x16   :  { %v197_v31 = vadd.f32 %v196_v23, %v184_v25  ;;  %v47_v32 = vadd.f32 %v46_v24, %v43_v26  ;;  %v186_v33 = vld [vmem:[#allocation2 + $0x78] sm:$0xff]  ;;  %p340_p9 = pnand %p339_p8, %p333_p5 }
  0x17   :  { %v56_v34 = vadd.f32 %v55_v27, %v44_v28  ;;  %v189_v35 = vadd.f32 %v188_v29, %v185_v30 }
  0x18   :  { %149 = vperm.xlu1 %303, %v34_v5   ;;  %144 = vperm.xlu0 %302, %v33_v6   ;;  %v198_v36 = vadd.f32 %v197_v31, %v186_v33  ;;  %v48_v37 = vrot.slane %v47_v32, 4 }
  0x19   :  { %v57_v38 = vrot.slane %v56_v34, 4  ;;  %v190_v39 = vrot.slane %v189_v35, 4 }
  0x1a   :  { %v199_v40 = vrot.slane %v198_v36, 4  ;;  %v49_v41 = vadd.f32 %v48_v37, %v47_v32 }
  0x1b   :  { %v58_v42 = vadd.f32 %v57_v38, %v56_v34  ;;  %v191_v43 = vadd.f32 %v190_v39, %v189_v35 }
  0x1c   :  { %159 = vperm.xlu1 %303, %v36_v7   ;;  %154 = vperm.xlu0 %302, %v35_v8   ;;  %v200_v44 = vadd.f32 %v199_v40, %v198_v36  ;;  %v50_v45 = vrot.slane %v49_v41, 2 }
  0x1d   :  { %v59_v46 = vrot.slane %v58_v42, 2  ;;  %v192_v47 = vrot.slane %v191_v43, 2 }
  0x1e   :  { %v201_v48 = vrot.slane %v200_v44, 2  ;;  %v51_v49 = vadd.f32 %v50_v45, %v49_v41 }
  0x1f   :  { %v60_v50 = vadd.f32 %v59_v46, %v58_v42  ;;  %v193_v51 = vadd.f32 %v192_v47, %v191_v43 }
  0x20   :  { %v202_v52 = vadd.f32 %v201_v48, %v200_v44  ;;  %v52_v53 = vrot.slane %v51_v49, 1 }
  0x21   :  { %v61_v54 = vrot.slane %v60_v50, 1  ;;  %v194_v55 = vrot.slane %v193_v51, 1 }
  0x22   :  { %v203_v56 = vrot.slane %v202_v52, 1  ;;  %v53_v57 = vadd.f32 %v52_v53, %v51_v49 }
  0x23   :  { %v62_v58 = vadd.f32 %v61_v54, %v60_v50  ;;  %v195_v59 = vadd.f32 %v194_v55, %v193_v51 }
  0x24   :  { %v204_v60 = vadd.f32 %v203_v56, %v202_v52  ;;  %v64_v61 = vmul.f32 0.03125, %v53_v57 }
  0x25   :  { %v65_v62 = vmul.f32 0.03125, %v62_v58  ;;  %v205_v63 = vmul.f32 0.03125, %v195_v59 }
  0x26   :  { %v206_v0 = vmul.f32 0.03125, %v204_v60  ;;  %v411_v1 = vsub.f32 %v37_v9, %v64_v61  ;;  %v413_v2 = vsub.f32 %v39_v10, %v64_v61  ;;  %v427_v15 = vsub.f32 %v41_v18, %v64_v61 }
  0x27   :  { %v415_v3 = vsub.f32 %v38_v11, %v65_v62  ;;  %v417_v4 = vsub.f32 %v40_v12, %v65_v62  ;;  %v419_v5 = vsub.f32 %v179_v13, %v205_v63  ;;  %v421_v6 = vsub.f32 %v181_v14, %v205_v63 }
  0x28   :  { %v423_v7 = vsub.f32 %v180_v16, %v206_v0  ;;  %v425_v8 = vsub.f32 %v182_v17, %v206_v0  ;;  %v74_v9 = vmul.f32 %v411_v1, %v411_v1  ;;  %v76_v10 = vmul.f32 %v413_v2, %v413_v2 }
  0x29   :  { %v433_v11 = vsub.f32 %v42_v20, %v65_v62  ;;  %v75_v12 = vmul.f32 %v415_v3, %v415_v3  ;;  %v77_v13 = vmul.f32 %v417_v4, %v417_v4  ;;  %v439_v14 = vsub.f32 %v183_v22, %v205_v63 }
  0x2a   :  { %v215_v16 = vmul.f32 %v419_v5, %v419_v5  ;;  %v217_v17 = vmul.f32 %v421_v6, %v421_v6  ;;  %v445_v18 = vsub.f32 %v184_v25, %v206_v0  ;;  %v216_v19 = vmul.f32 %v423_v7, %v423_v7 }
  0x2b   :  { %v218_v20 = vmul.f32 %v425_v8, %v425_v8  ;;  %v451_v21 = vsub.f32 %v43_v26, %v64_v61  ;;  %v78_v22 = vmul.f32 %v427_v15, %v427_v15  ;;  %v82_v23 = vadd.f32 %v76_v10, %v74_v9 }
  0x2c   :  { %v455_v24 = vsub.f32 %v44_v28, %v65_v62  ;;  %v79_v27 = vmul.f32 %v433_v11, %v433_v11  ;;  %v91_v29 = vadd.f32 %v77_v13, %v75_v12  ;;  %v459_v25 = vsub.f32 %v185_v30, %v205_v63 }
  0x2d   :  { %v219_v31 = vmul.f32 %v439_v14, %v439_v14  ;;  %v223_v32 = vadd.f32 %v217_v17, %v215_v16  ;;  %v463_v34 = vsub.f32 %v186_v33, %v206_v0  ;;  %v220_v26 = vmul.f32 %v445_v18, %v445_v18 }
  0x2e   :  { %v232_v35 = vadd.f32 %v218_v20, %v216_v19  ;;  %v80_v28 = vmul.f32 %v451_v21, %v451_v21  ;;  %v83_v36 = vadd.f32 %v82_v23, %v78_v22  ;;  %v81_v37 = vmul.f32 %v455_v24, %v455_v24 }
  0x2f   :  { %v92_v38 = vadd.f32 %v91_v29, %v79_v27  ;;  %v221_v30 = vmul.f32 %v459_v25, %v459_v25  ;;  %v224_v39 = vadd.f32 %v223_v32, %v219_v31  ;;  %v222_v33 = vmul.f32 %v463_v34, %v463_v34 }
  0x30   :  { %v233_v40 = vadd.f32 %v232_v35, %v220_v26  ;;  %v84_v41 = vadd.f32 %v83_v36, %v80_v28 }
  0x31   :  { %v93_v42 = vadd.f32 %v92_v38, %v81_v37  ;;  %v225_v43 = vadd.f32 %v224_v39, %v221_v30 }
  0x32   :  { %v234_v44 = vadd.f32 %v233_v40, %v222_v33  ;;  %v85_v45 = vrot.slane %v84_v41, 4 }
  0x33   :  { %v94_v46 = vrot.slane %v93_v42, 4  ;;  %v226_v47 = vrot.slane %v225_v43, 4 }
  0x34   :  { %v235_v48 = vrot.slane %v234_v44, 4  ;;  %v86_v49 = vadd.f32 %v85_v45, %v84_v41 }
  0x35   :  { %v95_v50 = vadd.f32 %v94_v46, %v93_v42  ;;  %v227_v51 = vadd.f32 %v226_v47, %v225_v43 }
  0x36   :  { %v236_v52 = vadd.f32 %v235_v48, %v234_v44  ;;  %v87_v53 = vrot.slane %v86_v49, 2 }
  0x37   :  { %v96_v54 = vrot.slane %v95_v50, 2  ;;  %v228_v55 = vrot.slane %v227_v51, 2 }
  0x38   :  { %v237_v56 = vrot.slane %v236_v52, 2  ;;  %v88_v57 = vadd.f32 %v87_v53, %v86_v49 }
  0x39   :  { %v97_v58 = vadd.f32 %v96_v54, %v95_v50  ;;  %v229_v59 = vadd.f32 %v228_v55, %v227_v51 }
  0x3a   :  { %v238_v60 = vadd.f32 %v237_v56, %v236_v52  ;;  %v89_v61 = vrot.slane %v88_v57, 1 }
  0x3b   :  { %v98_v62 = vrot.slane %v97_v58, 1  ;;  %v230_v63 = vrot.slane %v229_v59, 1 }
  0x3c   :  { %v239_v0 = vrot.slane %v238_v60, 1  ;;  %v90_v9 = vadd.f32 %v89_v61, %v88_v57 }
  0x3d   :  { %v99_v10 = vadd.f32 %v98_v62, %v97_v58  ;;  %v231_v12 = vadd.f32 %v230_v63, %v229_v59 }
  0x3e   :  { %v240_v13 = vadd.f32 %v239_v0, %v238_v60  ;;  %v100_v16 = vmul.f32 0.03125, %v90_v9 }
  0x3f   :  { %v101_v17 = vmul.f32 0.03125, %v99_v10  ;;  %v241_v19 = vmul.f32 0.03125, %v231_v12 }
  0x40   :  { %v242_v20 = vmul.f32 0.03125, %v240_v13  ;;  %v102_v22 = vadd.f32 1e-05, %v100_v16 }
  0x41   :  { %v103_v23 = vadd.f32 1e-05, %v101_v17  ;;  %v243_v27 = vadd.f32 1e-05, %v241_v19 }
  0x42   :  { %v244_v29 = vadd.f32 1e-05, %v242_v20  ;;  %304 = vrsqrt.f32 %v102_v22 }
  0x43   :  { %306 = vrsqrt.f32 %v103_v23 }
  0x44   :  { %308 = vrsqrt.f32 %v243_v27 }
  0x45   :  { %310 = vrsqrt.f32 %v244_v29 }
  0x4f   :  { %v305_v31 = vpop.eup %304 }
  0x50   :  { %v307_v32 = vpop.eup %306  ;;  %v108_v37 = vmul.f32 %v305_v31, %v413_v2  ;;  %v106_v33 = vmul.f32 %v305_v31, %v411_v1  ;;  %v112_v45 = vmul.f32 %v305_v31, %v451_v21 }
  0x51   :  { %v309_v26 = vpop.eup %308  ;;  %v109_v38 = vmul.f32 %v307_v32, %v417_v4  ;;  %v107_v40 = vmul.f32 %v307_v32, %v415_v3  ;;  %v113_v2 = vmul.f32 %v307_v32, %v455_v24  ;;  %v110_v4 = vmul.f32 %v305_v31, %v427_v15 }
  0x52   :  { %v311_v36 = vpop.eup %310  ;;  %v249_v30 = vmul.f32 %v309_v26, %v421_v6  ;;  %v247_v41 = vmul.f32 %v309_v26, %v419_v5  ;;  %v111_v6 = vmul.f32 %v307_v32, %v433_v11  ;;  %v251_v3 = vmul.f32 %v309_v26, %v439_v14 }
  0x53   :  { %v250_v39 = vmul.f32 %v311_v36, %v425_v8  ;;  %v248_v42 = vmul.f32 %v311_v36, %v423_v7  ;;  %v253_v8 = vmul.f32 %v309_v26, %v459_v25  ;;  %v254_v1 = vmul.f32 %v311_v36, %v463_v34 }
  0x54   :  { %v252_v5 = vmul.f32 %v311_v36, %v445_v18 }
  0x8b   :  { %v127_v35 = vpop.permute.xlu1 %126  ;;  %v117_v28 = vpop.permute.xlu0 %116 }
  0x8c   :  { %v134_v49 = vmul.f32 %v117_v28, %v106_v33  ;;  %v135_v21 = vmul.f32 %v117_v28, %v107_v40  ;;  %v255_v50 = vmul.f32 %v247_v41, %v117_v28  ;;  %v256_v24 = vmul.f32 %v248_v42, %v117_v28 }
  0x8d   :  { %v138_v60 = vmul.f32 %v127_v35, %v110_v4  ;;  %v139_v61 = vmul.f32 %v127_v35, %v111_v6  ;;  %v259_v62 = vmul.f32 %v251_v3, %v127_v35  ;;  %v260_v63 = vmul.f32 %v252_v5, %v127_v35 }
  0x8f   :  { %v132_v43 = vpop.permute.xlu1 %131  ;;  %v122_v44 = vpop.permute.xlu0 %121 }
  0x90   :  { %v136_v46 = vmul.f32 %v122_v44, %v108_v37  ;;  %v137_v7 = vmul.f32 %v122_v44, %v109_v38  ;;  %v257_v47 = vmul.f32 %v249_v30, %v122_v44  ;;  %v258_v48 = vmul.f32 %v250_v39, %v122_v44 }
  0x91   :  { %v140_v18 = vmul.f32 %v132_v43, %v112_v45  ;;  %v141_v56 = vmul.f32 %v132_v43, %v113_v2  ;;  %v261_v57 = vmul.f32 %v253_v8, %v132_v43  ;;  %v262_v58 = vmul.f32 %v254_v1, %v132_v43 }
  0x93   :  { %v150_v51 = vpop.permute.xlu1 %149  ;;  %v145_v15 = vpop.permute.xlu0 %144 }
  0x94   :  { %v164_v52 = vadd.f32 %v150_v51, %v136_v46  ;;  %v165_v11 = vadd.f32 %v150_v51, %v137_v7  ;;  %v265_v53 = vadd.f32 %v257_v47, %v150_v51  ;;  %v266_v25 = vadd.f32 %v258_v48, %v150_v51 }
  0x95   :  { %v162_v54 = vadd.f32 %v145_v15, %v134_v49  ;;  %v163_v34 = vadd.f32 %v145_v15, %v135_v21  ;;  %v263_v55 = vadd.f32 %v255_v50, %v145_v15  ;;  %v264_v14 = vadd.f32 %v256_v24, %v145_v15 }
  0x96   :  { %172 = vst [vmem:[#allocation5 + $0x10] sm:$0xff] %v164_v52  ;;  %173 = vst [vmem:[#allocation5 + $0x18] sm:$0xff] %v165_v11 }
  0x97   :  { %274 = vst [vmem:[#allocation5 + $0x50] sm:$0xff] %v265_v53  ;;  %275 = vst [vmem:[#allocation5 + $0x58] sm:$0xff] %v266_v25  ;;  %v160_v59 = vpop.permute.xlu1 %159  ;;  %v155_v0 = vpop.permute.xlu0 %154 }
  0x98   :  { %170 = vst [vmem:[#allocation5] sm:$0xff] %v162_v54  ;;  %171 = vst [vmem:[#allocation5 + $0x8] sm:$0xff] %v163_v34  ;;  %v168_v9 = vadd.f32 %v160_v59, %v140_v18  ;;  %v169_v10 = vadd.f32 %v160_v59, %v141_v56  ;;  %v269_v12 = vadd.f32 %v261_v57, %v160_v59 }
  0x99   :  { %272 = vst [vmem:[#allocation5 + $0x40] sm:$0xff] %v263_v55  ;;  %273 = vst [vmem:[#allocation5 + $0x48] sm:$0xff] %v264_v14  ;;  %v270_v13 = vadd.f32 %v262_v58, %v160_v59  ;;  %v166_v16 = vadd.f32 %v155_v0, %v138_v60  ;;  %v167_v17 = vadd.f32 %v155_v0, %v139_v61 }
  0x9a   :  { %v267_v19 = vadd.f32 %v259_v62, %v155_v0  ;;  %v268_v20 = vadd.f32 %v260_v63, %v155_v0  ;;  %176 = vst [vmem:[#allocation5 + $0x30] sm:$0xff] %v168_v9  ;;  %177 = vst [vmem:[#allocation5 + $0x38] sm:$0xff] %v169_v10 }
  0x9b   :  { %278 = vst [vmem:[#allocation5 + $0x70] sm:$0xff] %v269_v12  ;;  %279 = vst [vmem:[#allocation5 + $0x78] sm:$0xff] %v270_v13 }
  0x9c   :  { %174 = vst [vmem:[#allocation5 + $0x20] sm:$0xff] %v166_v16  ;;  %175 = vst [vmem:[#allocation5 + $0x28] sm:$0xff] %v167_v17 }
  0x9d   :  { %276 = vst [vmem:[#allocation5 + $0x60] sm:$0xff] %v267_v19  ;;  %277 = vst [vmem:[#allocation5 + $0x68] sm:$0xff] %v268_v20 }
  0x9e   :  { %343 = shalt.err (!%p340_p9)
}
  0x9f   :  { %291 = dma.vmem_to_hbm [thread:$0]  %s286_s2, 2048, %s500_s3, [#allocation4], %s357_s15, %s357_s15, %s358_s16  }
  0xa0   :  { %354 = dma.done.wait [#allocation4], 2048  }
  0xa1   :  { %355 = vsyncadd [#allocation4], 4294965248 }
  0xa2   :  { %295 = vsyncpa [#allocation3], 1 }
  0xa3   :  { %296 = vsyncpa [#allocation4], 1 }

</bundles_post_ra>
